<compile_context>
chip_gen: v7x
topology: tpu7x:2x2x1
jax: 0.10.0
libtpu: 0.0.40
codegen_flags: <defaults>
</compile_context>

<pallas_src>
import jax
import jax.numpy as jnp
from jax.experimental import pallas as pl
from jax.experimental.pallas import tpu as pltpu

LANE = 128
SUBLANE = 8


def _round_up(n, m):
    return ((n + m - 1) // m) * m


def _pad2d(a, rows, cols):
    r, c = a.shape
    return jnp.pad(a, ((0, rows - r), (0, cols - c)))


# --------------------------------------------------------------------------
# Kernel
# --------------------------------------------------------------------------
def _make_vae_kernel(epsilon_std: float, lat: int, l_p: int):
    def vae_kernel(
        x_ref, eps_ref,
        wh_ref, bh_ref,
        whead_ref, bhead_ref,
        whd_ref, bhd_ref,
        wxb_ref, bxb_ref,
        xbar_ref, zmean_ref, zlogvar_ref,
    ):
        # encoder: h = tanh(x @ Wh + bh)  (bf16 MXU inputs, f32 accumulation).
        # Zero-padded Wh/bh columns make h's padded lanes exactly tanh(0)=0.
        h = jnp.tanh(
            jnp.dot(x_ref[...], wh_ref[...], preferred_element_type=jnp.float32)
            + bh_ref[...]
        )

        # fused latent heads: [z_mean | z_log_var] in one MXU pass.
        # NOTE: bf16 inputs / f32 accumulation; switch w_heads to f32 if
        # tighter z_log_var fidelity is needed at very large hidden_dim.
        heads = (
            jnp.dot(h.astype(jnp.bfloat16), whead_ref[...],
                    preferred_element_type=jnp.float32)
            + bhead_ref[...]
        )
        z_mean = heads[:, :l_p]
        z_log_var = heads[:, l_p:]
        zmean_ref[...] = z_mean[:, :lat]       # small, exact-width f32 stores
        zlogvar_ref[...] = z_log_var[:, :lat]

        # reparameterization: z = mu + eps * exp(log_var / 2) * epsilon_std
        # (eps padded lanes are zero, so z's padded lanes stay zero.)
        z = z_mean + eps_ref[...].astype(jnp.float32) * jnp.exp(z_log_var * 0.5) * epsilon_std

        # decoder: h_dec = tanh(z @ Whd + bhd)
        h_dec = jnp.tanh(
            jnp.dot(z.astype(jnp.bfloat16), whd_ref[...],
                    preferred_element_type=jnp.float32)
            + bhd_ref[...]
        )

        # reconstruction: x_bar = sigmoid(h_dec @ Wxb + bxb)  (bf16 out)
        xbar_ref[...] = jax.nn.sigmoid(
            jnp.dot(h_dec.astype(jnp.bfloat16), wxb_ref[...],
                    preferred_element_type=jnp.float32)
            + bxb_ref[...]
        ).astype(xbar_ref.dtype)

    return vae_kernel


# --------------------------------------------------------------------------
# Parameter preparation (one-time): fuse heads, pad only internal dims.
# --------------------------------------------------------------------------
def prepare_params(params, input_dim, hidden_dim, latent_dim):
    """Fuse the two latent heads, pad internal feature dims to 128, cast to bf16.

    Dims touching external tensors (x / x_bar K,N = input_dim) stay unpadded so
    the wrapper never pads or slices the large activation streams.
    """
    h_p = _round_up(hidden_dim, LANE)
    l_p = _round_up(latent_dim, LANE)

    prep = dict(
        w_h=_pad2d(params["w_h"], input_dim, h_p).astype(jnp.bfloat16),   # K unpadded
        b_h=_pad2d(params["b_h"], 1, h_p),
        w_heads=jnp.concatenate(
            [_pad2d(params["w_zm"], h_p, l_p),
             _pad2d(params["w_zl"], h_p, l_p)], axis=1
        ).astype(jnp.bfloat16),
        b_heads=jnp.concatenate(
            [_pad2d(params["b_zm"], 1, l_p),
             _pad2d(params["b_zl"], 1, l_p)], axis=1
        ),
        w_hd=_pad2d(params["w_hd"], l_p, h_p).astype(jnp.bfloat16),
        b_hd=_pad2d(params["b_hd"], 1, h_p),
        w_xb=_pad2d(params["w_xb"], h_p, input_dim).astype(jnp.bfloat16),  # N unpadded
        b_xb=params["b_xb"],                                               # [1, input_dim]
    )
    dims = dict(input_dim=input_dim, hidden_dim=hidden_dim,
                latent_dim=latent_dim, h_p=h_p, l_p=l_p)
    return prep, dims


# --------------------------------------------------------------------------
# Tile / VMEM selection (generation-aware)
# --------------------------------------------------------------------------
def _choose_tile_and_vmem(batch, d, lat, h_p, l_p, weight_bytes):
    """MXU-aligned batch tile, bounded by a generation-aware VMEM budget,
    split into >= 2 grid steps when the batch permits (megacore / pipelining)."""
    # Per-row VMEM bytes: double-buffered pipelined I/O + f32 intermediates
    # (+ bf16 matmul-input copies), with a compiler margin.
    io_row = 2 * (2 * d + 2 * l_p            # x, eps in (bf16)
                  + 2 * d + 4 * lat + 4 * lat)   # x_bar (bf16), z_mean/z_log_var (f32)
    mid_row = 4 * (h_p + 2 * l_p + l_p + h_p) + 2 * (h_p + l_p + h_p)
    per_row = int((io_row + mid_row) * 1.5)

    try:   # 64 MiB physical on v7x, 128 MiB on v5e/v6e
        vmem_cap = int(pltpu.get_tpu_info().vmem_capacity_bytes)
    except Exception:
        vmem_cap = 64 * 1024 * 1024
    budget = int(vmem_cap * 0.55) - weight_bytes   # resident weights single-buffered
    tb_mem = max(SUBLANE, (budget // max(per_row, 1)) // SUBLANE * SUBLANE)

    # Target tile: 256-aligned (v6e/v7x 2x256^2 MXU; also full occupancy on
    # v5e's 4x128^2) with >= 4 grid steps for large B, >= 2 for moderate B.
    if batch >= 4 * 256:
        tb_want = min(512, max(256, (batch // 4) // 256 * 256))
    elif batch >= 2 * 128:
        tb_want = 128
    elif batch >= 2 * 16:
        tb_want = _round_up(-(-batch // 2), 16)    # >=2 tiles, bf16 sublane packing
    else:
        tb_want = _round_up(max(batch, 1), SUBLANE)  # tiny batch: single step

    tb = max(SUBLANE, min(tb_want, tb_mem))
    for align in (256, 128, 16, SUBLANE):          # keep alignment after VMEM clamp
        if tb >= align:
            tb = tb // align * align
            break

    vmem_need = weight_bytes + tb * per_row + (4 << 20)
    vmem_limit = int(min(max(vmem_need, 16 << 20), int(vmem_cap * 0.75)))
    return tb, vmem_limit


# --------------------------------------------------------------------------
# Forward wrapper
# --------------------------------------------------------------------------
def vae_forward(x, eps, prep, dims, epsilon_std=1.0, out_dtype=jnp.bfloat16):
    """x: [B, input_dim], eps: [B, latent_dim] standard-normal noise."""
    B = x.shape[0]
    d, lat = dims["input_dim"], dims["latent_dim"]
    h_p, l_p = dims["h_p"], dims["l_p"]

    # Single wrapper-side cast of the big activation stream to bf16 (instead of
    # a per-tile cast in the kernel).  No feature / batch padding round trips.
    if x.dtype != jnp.bfloat16:
        x = x.astype(jnp.bfloat16)
    # TODO(synk): generate eps in-kernel (pltpu.prng_seed + stateful_normal) to
    # drop this input stream entirely; kept host-side for parity with the ref.
    if lat != l_p:
        eps = jnp.pad(eps, ((0, 0), (0, l_p - lat)))
    eps = eps.astype(jnp.bfloat16)

    weight_bytes = sum(int(v.size * v.dtype.itemsize) for v in prep.values())
    tb, vmem_limit = _choose_tile_and_vmem(B, d, lat, h_p, l_p, weight_bytes)
    n_tiles = pl.cdiv(B, tb)   # partial last tile: OOB writes are dropped

    def row_spec(feat):
        return pl.BlockSpec((tb, feat), lambda i: (i, 0))

    def resident(arr):
        # Constant index_map -> fetched once; single-buffered to save VMEM.
        return pl.BlockSpec(arr.shape, lambda i: (0, 0),
                            pipeline_mode=pl.Buffered(1))

    in_specs = [
        row_spec(d),                    # x tile (bf16)
        row_spec(l_p),                  # eps tile (bf16, lane-padded)
        resident(prep["w_h"]), resident(prep["b_h"]),
        resident(prep["w_heads"]), resident(prep["b_heads"]),
        resident(prep["w_hd"]), resident(prep["b_hd"]),
        resident(prep["w_xb"]), resident(prep["b_xb"]),
    ]
    out_specs = (row_spec(d), row_spec(lat), row_spec(lat))
    out_shape = (
        jax.ShapeDtypeStruct((B, d), out_dtype),       # x_bar
        jax.ShapeDtypeStruct((B, lat), jnp.float32),   # z_mean
        jax.ShapeDtypeStruct((B, lat), jnp.float32),   # z_log_var
    )

    flops = 2 * B * (d * h_p + h_p * 2 * l_p + l_p * h_p + h_p * d)
    transcendentals = B * (2 * h_p + l_p + d)
    bytes_accessed = int(B * (d + l_p) * 2 + weight_bytes
                         + B * d * jnp.dtype(out_dtype).itemsize
                         + B * 2 * lat * 4)
    cost = pl.CostEstimate(flops=flops, transcendentals=transcendentals,
                           bytes_accessed=bytes_accessed)

    return pl.pallas_call(
        _make_vae_kernel(float(epsilon_std), lat, l_p),
        out_shape=out_shape,
        grid=(n_tiles,),
        in_specs=in_specs,
        out_specs=out_specs,
        compiler_params=pltpu.CompilerParams(
            dimension_semantics=("parallel",),
            vmem_limit_bytes=vmem_limit),
        cost_estimate=cost,
    )(x, eps,
      prep["w_h"], prep["b_h"],
      prep["w_heads"], prep["b_heads"],
      prep["w_hd"], prep["b_hd"],
      prep["w_xb"], prep["b_xb"])


# --------------------------------------------------------------------------
# Init & pure-JAX reference (matches the PyTorch forward)
# --------------------------------------------------------------------------
def init_params(key, input_dim, hidden_dim, latent_dim):
    """Deterministic synthetic init. Weights stored as [in, out] (W.T vs torch)."""
    ks = jax.random.split(key, 10)

    def lin(kw, kb, fan_in, fan_out):
        bound = 1.0 / jnp.sqrt(fan_in)
        w = jax.random.uniform(kw, (fan_in, fan_out), jnp.float32, -bound, bound)
        b = jax.random.uniform(kb, (1, fan_out), jnp.float32, -bound, bound)
        return w, b

    w_h, b_h = lin(ks[0], ks[1], input_dim, hidden_dim)
    w_zm, b_zm = lin(ks[2], ks[3], hidden_dim, latent_dim)
    w_zl, b_zl = lin(ks[4], ks[5], hidden_dim, latent_dim)
    w_hd, b_hd = lin(ks[6], ks[7], latent_dim, hidden_dim)
    w_xb, b_xb = lin(ks[8], ks[9], hidden_dim, input_dim)
    return dict(
        w_h=w_h, b_h=b_h, w_zm=w_zm, b_zm=b_zm, w_zl=w_zl, b_zl=b_zl,
        w_hd=w_hd, b_hd=b_hd, w_xb=w_xb, b_xb=b_xb,
    )


def vae_forward_ref(x, eps, p, epsilon_std=1.0):
    h = jnp.tanh(x @ p["w_h"] + p["b_h"])
    z_mean = h @ p["w_zm"] + p["b_zm"]
    z_log_var = h @ p["w_zl"] + p["b_zl"]
    z = z_mean + eps * jnp.exp(z_log_var / 2.0) * epsilon_std
    h_dec = jnp.tanh(z @ p["w_hd"] + p["b_hd"])
    x_bar = jax.nn.sigmoid(h_dec @ p["w_xb"] + p["b_xb"])
    return x_bar, z_mean, z_log_var


if __name__ == "__main__":
    B, input_dim, hidden_dim, latent_dim = 8, 32, 64, 16
    epsilon_std = 1.0

    key = jax.random.PRNGKey(0)
    k_x, k_eps, k_params = jax.random.split(key, 3)

    x = jax.random.normal(k_x, (B, input_dim), jnp.float32)
    eps = jax.random.normal(k_eps, (B, latent_dim), jnp.float32)
    params = init_params(k_params, input_dim, hidden_dim, latent_dim)
    prep, dims = prepare_params(params, input_dim, hidden_dim, latent_dim)

    fwd = jax.jit(lambda xb, ep, pp: vae_forward(xb, ep, pp, dims, epsilon_std))
    x_bar, z_mean, z_log_var = fwd(x, eps, prep)
    jax.block_until_ready((x_bar, z_mean, z_log_var))

    # Sanity check against pure-f32 reference (bf16 matmuls / bf16 I/O -> looser tol).
    x_bar_r, z_mean_r, z_log_var_r = vae_forward_ref(x, eps, params, epsilon_std)
    assert x_bar.shape == (B, input_dim) and x_bar.dtype == jnp.bfloat16
    assert z_mean.shape == (B, latent_dim) and z_log_var.shape == (B, latent_dim)
    assert jnp.allclose(x_bar.astype(jnp.float32), x_bar_r, atol=3e-2, rtol=3e-2)
    assert jnp.allclose(z_mean, z_mean_r, atol=2e-2, rtol=2e-2)
    assert jnp.allclose(z_log_var, z_log_var_r, atol=2e-2, rtol=2e-2)

    print("KERNEL_OK")
</pallas_src>

<mosaic_0001>
module attributes {stable_mosaic.version = 11 : i64} {
  func.func @vae_kernel(%arg0: i32, %arg1: memref<8x32xbf16, #tpu.memory_space<vmem>>, %arg2: memref<8x128xbf16, #tpu.memory_space<vmem>>, %arg3: memref<32x128xbf16, #tpu.memory_space<vmem>>, %arg4: memref<1x128xf32, #tpu.memory_space<vmem>>, %arg5: memref<128x256xbf16, #tpu.memory_space<vmem>>, %arg6: memref<1x256xf32, #tpu.memory_space<vmem>>, %arg7: memref<128x128xbf16, #tpu.memory_space<vmem>>, %arg8: memref<1x128xf32, #tpu.memory_space<vmem>>, %arg9: memref<128x32xbf16, #tpu.memory_space<vmem>>, %arg10: memref<1x32xf32, #tpu.memory_space<vmem>>, %arg11: memref<8x32xbf16, #tpu.memory_space<vmem>>, %arg12: memref<8x16xf32, #tpu.memory_space<vmem>>, %arg13: memref<8x16xf32, #tpu.memory_space<vmem>>) attributes {dimension_semantics = [#tpu.dimension_semantics<parallel>], iteration_bounds = array<i64: 1>, scalar_prefetch = 0 : i64, scratch_operands = 0 : i64, tpu.core_type = #tpu.core_type<tc>, window_params = [{transform_indices = @transform_0, window_bounds = array<i64: 8, 32>}, {transform_indices = @transform_1, window_bounds = array<i64: 8, 128>}, {pipeline_mode = #tpu.pipeline_mode<synchronous>, transform_indices = @transform_2, window_bounds = array<i64: 32, 128>}, {pipeline_mode = #tpu.pipeline_mode<synchronous>, transform_indices = @transform_3, window_bounds = array<i64: 1, 128>}, {pipeline_mode = #tpu.pipeline_mode<synchronous>, transform_indices = @transform_4, window_bounds = array<i64: 128, 256>}, {pipeline_mode = #tpu.pipeline_mode<synchronous>, transform_indices = @transform_5, window_bounds = array<i64: 1, 256>}, {pipeline_mode = #tpu.pipeline_mode<synchronous>, transform_indices = @transform_6, window_bounds = array<i64: 128, 128>}, {pipeline_mode = #tpu.pipeline_mode<synchronous>, transform_indices = @transform_7, window_bounds = array<i64: 1, 128>}, {pipeline_mode = #tpu.pipeline_mode<synchronous>, transform_indices = @transform_8, window_bounds = array<i64: 128, 32>}, {pipeline_mode = #tpu.pipeline_mode<synchronous>, transform_indices = @transform_9, window_bounds = array<i64: 1, 32>}, {transform_indices = @transform_10, window_bounds = array<i64: 8, 32>}, {transform_indices = @transform_11, window_bounds = array<i64: 8, 16>}, {transform_indices = @transform_12, window_bounds = array<i64: 8, 16>}]} {
    %c0 = arith.constant 0 : index
    %c0_0 = arith.constant 0 : index
    %0 = vector.load %arg1[%c0, %c0_0] : memref<8x32xbf16, #tpu.memory_space<vmem>>, vector<8x32xbf16>
    %c0_1 = arith.constant 0 : index
    %c0_2 = arith.constant 0 : index
    %1 = vector.load %arg3[%c0_1, %c0_2] : memref<32x128xbf16, #tpu.memory_space<vmem>>, vector<32x128xbf16>
    %cst = arith.constant dense<0.000000e+00> : vector<8x128xf32>
    %2 = tpu.matmul %0, %1, %cst {dimension_numbers = #tpu.dot_dimension_numbers<[1], [0], [0], [1], [0, 0, 1, 1], [], []>} : vector<8x32xbf16>, vector<32x128xbf16>, vector<8x128xf32> -> vector<8x128xf32>
    %c0_3 = arith.constant 0 : index
    %c0_4 = arith.constant 0 : index
    %3 = vector.load %arg4[%c0_3, %c0_4] : memref<1x128xf32, #tpu.memory_space<vmem>>, vector<1x128xf32>
    %4 = vector.broadcast %3 : vector<1x128xf32> to vector<8x128xf32>
    %5 = arith.addf %2, %4 : vector<8x128xf32>
    %6 = math.tanh %5 : vector<8x128xf32>
    %7 = arith.truncf %6 : vector<8x128xf32> to vector<8x128xbf16>
    %c0_5 = arith.constant 0 : index
    %c0_6 = arith.constant 0 : index
    %8 = vector.load %arg5[%c0_5, %c0_6] : memref<128x256xbf16, #tpu.memory_space<vmem>>, vector<128x256xbf16>
    %cst_7 = arith.constant dense<0.000000e+00> : vector<8x256xf32>
    %9 = tpu.matmul %7, %8, %cst_7 {dimension_numbers = #tpu.dot_dimension_numbers<[1], [0], [0], [1], [0, 0, 1, 1], [], []>} : vector<8x128xbf16>, vector<128x256xbf16>, vector<8x256xf32> -> vector<8x256xf32>
    %c0_8 = arith.constant 0 : index
    %c0_9 = arith.constant 0 : index
    %10 = vector.load %arg6[%c0_8, %c0_9] : memref<1x256xf32, #tpu.memory_space<vmem>>, vector<1x256xf32>
    %11 = vector.broadcast %10 : vector<1x256xf32> to vector<8x256xf32>
    %12 = arith.addf %9, %11 : vector<8x256xf32>
    %13 = vector.extract_strided_slice %12 {offsets = [0, 0], sizes = [8, 128], strides = [1, 1]} : vector<8x256xf32> to vector<8x128xf32>
    %14 = vector.extract_strided_slice %12 {offsets = [0, 128], sizes = [8, 128], strides = [1, 1]} : vector<8x256xf32> to vector<8x128xf32>
    %15 = vector.extract_strided_slice %13 {offsets = [0, 0], sizes = [8, 16], strides = [1, 1]} : vector<8x128xf32> to vector<8x16xf32>
    %c0_10 = arith.constant 0 : index
    %c0_11 = arith.constant 0 : index
    %16 = vector.load %arg12[%c0_10, %c0_11] : memref<8x16xf32, #tpu.memory_space<vmem>>, vector<8x16xf32>
    tpu.vector_store %arg12[%c0_10, %c0_11], %15 {strides = array<i32>} : memref<8x16xf32, #tpu.memory_space<vmem>>, vector<8x16xf32>,
    %17 = vector.extract_strided_slice %14 {offsets = [0, 0], sizes = [8, 16], strides = [1, 1]} : vector<8x128xf32> to vector<8x16xf32>
    %c0_12 = arith.constant 0 : index
    %c0_13 = arith.constant 0 : index
    %18 = vector.load %arg13[%c0_12, %c0_13] : memref<8x16xf32, #tpu.memory_space<vmem>>, vector<8x16xf32>
    tpu.vector_store %arg13[%c0_12, %c0_13], %17 {strides = array<i32>} : memref<8x16xf32, #tpu.memory_space<vmem>>, vector<8x16xf32>,
    %c0_14 = arith.constant 0 : index
    %c0_15 = arith.constant 0 : index
    %19 = vector.load %arg2[%c0_14, %c0_15] : memref<8x128xbf16, #tpu.memory_space<vmem>>, vector<8x128xbf16>
    %20 = arith.extf %19 : vector<8x128xbf16> to vector<8x128xf32>
    %cst_16 = arith.constant 5.000000e-01 : f32
    %21 = vector.broadcast %cst_16 : f32 to vector<8x128xf32>
    %22 = arith.mulf %14, %21 : vector<8x128xf32>
    %23 = math.exp %22 : vector<8x128xf32>
    %24 = arith.mulf %20, %23 : vector<8x128xf32>
    %cst_17 = arith.constant 1.000000e+00 : f32
    %25 = vector.broadcast %cst_17 : f32 to vector<8x128xf32>
    %26 = arith.mulf %24, %25 : vector<8x128xf32>
    %27 = arith.addf %13, %26 : vector<8x128xf32>
    %28 = arith.truncf %27 : vector<8x128xf32> to vector<8x128xbf16>
    %c0_18 = arith.constant 0 : index
    %c0_19 = arith.constant 0 : index
    %29 = vector.load %arg7[%c0_18, %c0_19] : memref<128x128xbf16, #tpu.memory_space<vmem>>, vector<128x128xbf16>
    %cst_20 = arith.constant dense<0.000000e+00> : vector<8x128xf32>
    %30 = tpu.matmul %28, %29, %cst_20 {dimension_numbers = #tpu.dot_dimension_numbers<[1], [0], [0], [1], [0, 0, 1, 1], [], []>} : vector<8x128xbf16>, vector<128x128xbf16>, vector<8x128xf32> -> vector<8x128xf32>
    %c0_21 = arith.constant 0 : index
    %c0_22 = arith.constant 0 : index
    %31 = vector.load %arg8[%c0_21, %c0_22] : memref<1x128xf32, #tpu.memory_space<vmem>>, vector<1x128xf32>
    %32 = vector.broadcast %31 : vector<1x128xf32> to vector<8x128xf32>
    %33 = arith.addf %30, %32 : vector<8x128xf32>
    %34 = math.tanh %33 : vector<8x128xf32>
    %35 = arith.truncf %34 : vector<8x128xf32> to vector<8x128xbf16>
    %c0_23 = arith.constant 0 : index
    %c0_24 = arith.constant 0 : index
    %36 = vector.load %arg9[%c0_23, %c0_24] : memref<128x32xbf16, #tpu.memory_space<vmem>>, vector<128x32xbf16>
    %cst_25 = arith.constant dense<0.000000e+00> : vector<8x32xf32>
    %37 = tpu.matmul %35, %36, %cst_25 {dimension_numbers = #tpu.dot_dimension_numbers<[1], [0], [0], [1], [0, 0, 1, 1], [], []>} : vector<8x128xbf16>, vector<128x32xbf16>, vector<8x32xf32> -> vector<8x32xf32>
    %c0_26 = arith.constant 0 : index
    %c0_27 = arith.constant 0 : index
    %38 = vector.load %arg10[%c0_26, %c0_27] : memref<1x32xf32, #tpu.memory_space<vmem>>, vector<1x32xf32>
    %39 = vector.broadcast %38 : vector<1x32xf32> to vector<8x32xf32>
    %40 = arith.addf %37, %39 : vector<8x32xf32>
    %41 = arith.negf %40 : vector<8x32xf32>
    %42 = math.exp %41 : vector<8x32xf32>
    %cst_28 = arith.constant 1.000000e+00 : f32
    %43 = vector.broadcast %cst_28 : f32 to vector<8x32xf32>
    %44 = arith.addf %43, %42 : vector<8x32xf32>
    %45 = arith.divf %43, %44 : vector<8x32xf32>
    %46 = arith.truncf %45 : vector<8x32xf32> to vector<8x32xbf16>
    %c0_29 = arith.constant 0 : index
    %c0_30 = arith.constant 0 : index
    %47 = vector.load %arg11[%c0_29, %c0_30] : memref<8x32xbf16, #tpu.memory_space<vmem>>, vector<8x32xbf16>
    tpu.vector_store %arg11[%c0_29, %c0_30], %46 {strides = array<i32>} : memref<8x32xbf16, #tpu.memory_space<vmem>>, vector<8x32xbf16>,
    return
  }
  func.func @transform_0(%arg0: i32) -> (i32, i32) {
    %c0_i32 = arith.constant 0 : i32
    %c0_i32_0 = arith.constant 0 : i32
    return %arg0, %c0_i32 : i32, i32
  }
  func.func @transform_1(%arg0: i32) -> (i32, i32) {
    %c0_i32 = arith.constant 0 : i32
    %c0_i32_0 = arith.constant 0 : i32
    return %arg0, %c0_i32 : i32, i32
  }
  func.func @transform_2(%arg0: i32) -> (i32, i32) {
    %c0_i32 = arith.constant 0 : i32
    %c0_i32_0 = arith.constant 0 : i32
    %c0_i32_1 = arith.constant 0 : i32
    return %c0_i32, %c0_i32_0 : i32, i32
  }
  func.func @transform_3(%arg0: i32) -> (i32, i32) {
    %c0_i32 = arith.constant 0 : i32
    %c0_i32_0 = arith.constant 0 : i32
    %c0_i32_1 = arith.constant 0 : i32
    return %c0_i32, %c0_i32_0 : i32, i32
  }
  func.func @transform_4(%arg0: i32) -> (i32, i32) {
    %c0_i32 = arith.constant 0 : i32
    %c0_i32_0 = arith.constant 0 : i32
    %c0_i32_1 = arith.constant 0 : i32
    return %c0_i32, %c0_i32_0 : i32, i32
  }
  func.func @transform_5(%arg0: i32) -> (i32, i32) {
    %c0_i32 = arith.constant 0 : i32
    %c0_i32_0 = arith.constant 0 : i32
    %c0_i32_1 = arith.constant 0 : i32
    return %c0_i32, %c0_i32_0 : i32, i32
  }
  func.func @transform_6(%arg0: i32) -> (i32, i32) {
    %c0_i32 = arith.constant 0 : i32
    %c0_i32_0 = arith.constant 0 : i32
    %c0_i32_1 = arith.constant 0 : i32
    return %c0_i32, %c0_i32_0 : i32, i32
  }
  func.func @transform_7(%arg0: i32) -> (i32, i32) {
    %c0_i32 = arith.constant 0 : i32
    %c0_i32_0 = arith.constant 0 : i32
    %c0_i32_1 = arith.constant 0 : i32
    return %c0_i32, %c0_i32_0 : i32, i32
  }
  func.func @transform_8(%arg0: i32) -> (i32, i32) {
    %c0_i32 = arith.constant 0 : i32
    %c0_i32_0 = arith.constant 0 : i32
    %c0_i32_1 = arith.constant 0 : i32
    return %c0_i32, %c0_i32_0 : i32, i32
  }
  func.func @transform_9(%arg0: i32) -> (i32, i32) {
    %c0_i32 = arith.constant 0 : i32
    %c0_i32_0 = arith.constant 0 : i32
    %c0_i32_1 = arith.constant 0 : i32
    return %c0_i32, %c0_i32_0 : i32, i32
  }
  func.func @transform_10(%arg0: i32) -> (i32, i32) {
    %c0_i32 = arith.constant 0 : i32
    %c0_i32_0 = arith.constant 0 : i32
    return %arg0, %c0_i32 : i32, i32
  }
  func.func @transform_11(%arg0: i32) -> (i32, i32) {
    %c0_i32 = arith.constant 0 : i32
    %c0_i32_0 = arith.constant 0 : i32
    return %arg0, %c0_i32 : i32, i32
  }
  func.func @transform_12(%arg0: i32) -> (i32, i32) {
    %c0_i32 = arith.constant 0 : i32
    %c0_i32_0 = arith.constant 0 : i32
    return %arg0, %c0_i32 : i32, i32
  }
}

</mosaic_0001>

<bundles_post_ra>
// kernel: _lambda_.1
= control target key start
LH: loop header
LB: loop body
LE: loop exit
PB: predicated region body
PF: predicated region fallthrough
CT: control target
= control target key end

     0   :  { %18 = vsyncpa [#allocation3], 0  ;;  %s1211_s0 = inlined_call_operand.vmem [shape: bf16[8,32], index: 0, kind: input, shape index: {}]   ;;  %s1212_s1 = inlined_call_operand.vmem [shape: bf16[8,128], index: 1, kind: input, shape index: {}]   ;;  %s1213_s2 = inlined_call_operand.hbm [shape: bf16[32,128], index: 2, kind: input, shape index: {}]   ;;  %s1214_s3 = inlined_call_operand.vmem [shape: f32[1,128], index: 3, kind: input, shape index: {}]   ;;  %s1215_s4 = inlined_call_operand.vmem [shape: bf16[128,256], index: 4, kind: input, shape index: {}]   ;;  %s1216_s5 = inlined_call_operand.vmem [shape: f32[1,256], index: 5, kind: input, shape index: {}]   ;;  %s1217_s6 = inlined_call_operand.hbm [shape: bf16[128,128], index: 6, kind: input, shape index: {}]   ;;  %s1218_s7 = inlined_call_operand.hbm [shape: f32[1,128], index: 7, kind: input, shape index: {}]   ;;  %s1219_s8 = inlined_call_operand.vmem [shape: bf16[128,32], index: 8, kind: input, shape index: {}]   ;;  %s1220_s9 = inlined_call_operand.hbm [shape: f32[1,32], index: 9, kind: input, shape index: {}]   ;;  %s1221_s10 = inlined_call_operand.hbm [shape: bf16[8,32], index: 10, kind: output, shape index: {0}]   ;;  %s1222_s11 = inlined_call_operand.hbm [shape: f32[8,16], index: 11, kind: output, shape index: {1}]   ;;  %s1223_s12 = inlined_call_operand.hbm [shape: f32[8,16], index: 12, kind: output, shape index: {2}]  }
   0x1   :  { %19 = vsyncpa [#allocation6], 0 }
   0x2   :  { %20 = vsyncpa [#allocation9], 0 }
   0x3   :  { %21 = vsyncpa [#allocation4], 0 }
   0x4   :  { %22 = vsyncpa [#allocation12], 0  ;;  %s935_s21 = smov [#allocation5]   ;;  %s936_s23 = smov [#allocation2]  }
   0x5   :  { %s50_s22 = sshll.u32 %s935_s21, 4  ;;  %s32_s24 = sshll.u32 %s936_s23, 4  ;;  %s51_s22 = int_to_ptr.vmem [resolvable:$true] %s50_s22  ;;  %s1012_s24 = int_to_ptr.vmem [resolvable:$true] %s32_s24 }
   0x6   :  { %s771_s27 = scalar_lea.hbm %s1217_s6, 1024 }
   0x7   :  { %p772_p0 = scmp.ne.s32.totalorder %s1217_s6, %s771_s27  ;;  %p775_p1 = scmp.lt.u32.totalorder %s771_s27, %s1217_s6 }
   0x9   :  { %p777_p2 = pnand %p775_p1, %p772_p0 }
   0xb   :  { %780 = shalt.err (!%p777_p2)
}
   0xc   :  { %s781_s14 = scalar_lea.vmem %s51_s22, 1024  ;;  %p786_p4 = scmp.lt.s32.totalorder %s51_s22, %s51_s22 }
   0xd   :  { %p782_p3 = scmp.ne.s32.totalorder %s51_s22, %s781_s14  ;;  %p787_p5 = scmp.lt.s32.totalorder %s781_s14, %s781_s14 }
   0xf   :  { %p788_p6 = por %p787_p5, %p786_p4 }
  0x11   :  { %p789_p7 = pnand %p788_p6, %p782_p3 }
  0x13   :  { %792 = shalt.err (!%p789_p7)
}
  0x14   :  { %s937_s15 = smov 64   ;;  %s938_s16 = smov 4  }
  0x15   :  { %56 = dma.hbm_to_vmem [thread:$0]  %s1217_s6, 1024, %s51_s22, [#allocation6], %s937_s15, %s937_s15, %s938_s16  }
  0x16   :  { %s793_s21 = scalar_lea.hbm %s1213_s2, 256 }
  0x17   :  { %p794_p8 = scmp.ne.s32.totalorder %s1213_s2, %s793_s21  ;;  %p797_p9 = scmp.lt.u32.totalorder %s793_s21, %s1213_s2 }
  0x19   :  { %p799_p10 = pnand %p797_p9, %p794_p8 }
  0x1b   :  { %802 = shalt.err (!%p799_p10)
}
  0x1c   :  { %s803_s28 = scalar_lea.vmem %s1012_s24, 256  ;;  %p808_p12 = scmp.lt.s32.totalorder %s1012_s24, %s1012_s24 }
  0x1d   :  { %p804_p11 = scmp.ne.s32.totalorder %s1012_s24, %s803_s28  ;;  %p809_p13 = scmp.lt.s32.totalorder %s803_s28, %s803_s28 }
  0x1f   :  { %p810_p0 = por %p809_p13, %p808_p12 }
  0x21   :  { %p811_p1 = pnand %p810_p0, %p804_p11 }
  0x23   :  { %814 = shalt.err (!%p811_p1)
}
  0x24   :  { %38 = dma.hbm_to_vmem [thread:$0]  %s1213_s2, 256, %s1012_s24, [#allocation3], %s937_s15, %s937_s15, %s938_s16  }
  0x25   :  { %s939_s29 = smov [#allocation7]   ;;  %s940_s13 = smov [#allocation8]  }
  0x26   :  { %s63_s30 = sshll.u32 %s939_s29, 4  ;;  %s75_s14 = sshll.u32 %s940_s13, 4  ;;  %s64_s30 = int_to_ptr.vmem [resolvable:$true] %s63_s30  ;;  %s76_s14 = int_to_ptr.vmem [resolvable:$true] %s75_s14 }
  0x27   :  { %s815_s19 = scalar_lea.hbm %s1218_s7, 16 }
  0x28   :  { %p816_p2 = scmp.ne.s32.totalorder %s1218_s7, %s815_s19  ;;  %p819_p3 = scmp.lt.u32.totalorder %s815_s19, %s1218_s7 }
  0x2a   :  { %p821_p4 = pnand %p819_p3, %p816_p2 }
  0x2c   :  { %824 = shalt.err (!%p821_p4)
}
  0x2d   :  { %s825_s2 = scalar_lea.vmem %s64_s30, 16  ;;  %s829_s24 = scalar_lea.vmem %s64_s30, 32 }
  0x2e   :  { %p826_p5 = scmp.ne.s32.totalorder %s64_s30, %s825_s2  ;;  %p830_p6 = scmp.lt.s32.totalorder %s64_s30, %s64_s30 }
  0x2f   :  { %p831_p7 = scmp.lt.s32.totalorder %s829_s24, %s825_s2 }
  0x31   :  { %p832_p8 = por %p831_p7, %p830_p6 }
  0x33   :  { %p833_p9 = pnand %p832_p8, %p826_p5 }
  0x35   :  { %836 = shalt.err (!%p833_p9)
}
  0x36   :  { %66 = dma.hbm_to_vmem [thread:$0]  %s1218_s7, 16, %s64_s30, [#allocation6]  }
  0x37   :  { %s837_s28 = scalar_lea.hbm %s1220_s9, 16 }
  0x38   :  { %p838_p10 = scmp.ne.s32.totalorder %s1220_s9, %s837_s28  ;;  %p841_p11 = scmp.lt.u32.totalorder %s837_s28, %s1220_s9 }
  0x3a   :  { %p843_p12 = pnand %p841_p11, %p838_p10 }
  0x3c   :  { %846 = shalt.err (!%p843_p12)
}
  0x3d   :  { %s847_s17 = scalar_lea.vmem %s76_s14, 16  ;;  %s851_s18 = scalar_lea.vmem %s76_s14, 32 }
  0x3e   :  { %p848_p13 = scmp.ne.s32.totalorder %s76_s14, %s847_s17  ;;  %p852_p0 = scmp.lt.s32.totalorder %s76_s14, %s76_s14 }
  0x3f   :  { %p853_p1 = scmp.lt.s32.totalorder %s851_s18, %s847_s17 }
  0x41   :  { %p854_p2 = por %p853_p1, %p852_p0 }
  0x43   :  { %p855_p3 = pnand %p854_p2, %p848_p13 }
  0x45   :  { %858 = shalt.err (!%p855_p3)
}
  0x46   :  { %78 = dma.hbm_to_vmem [thread:$0]  %s1220_s9, 16, %s76_s14, [#allocation9]  }
  0x47   :  { %925 = dma.done.wait [#allocation3], 256  }
  0x48   :  { %926 = vsyncadd [#allocation3], 4294967040 }
  0x49   :  { %927 = dma.done.wait [#allocation6], 1040  }
  0x4a   :  { %928 = vsyncadd [#allocation6], 4294966256 }
  0x4b   :  { %929 = dma.done.wait [#allocation9], 16  }
  0x4c   :  { %930 = vsyncadd [#allocation9], 4294967280  ;;  %v941_v0 = vmov 0.0   ;;  %vm942_vm0 = vmmov 0   ;;  %v719_v1 = vld [vmem:[#allocation2] sm:$0xff]   ;;  %v720_v2 = vld [vmem:[#allocation2 + $0x8] sm:$0xff]   ;;  %v180_v41 = vlaneseq }
  0x4d   :  { %659 = vmatprep.subr.bf16.mxu0 %v941_v0  ;;  %663 = vmatprep.mubr.msk.bf16.mxu0 %vm942_vm0, %v941_v0  ;;  %v721_v3 = vld [vmem:[%s1215_s4 + $0x4] ss:$8 sps:$4 sm:$0xff]   ;;  %v723_v4 = vld [vmem:[%s1215_s4] ss:$8 sps:$4 sm:$0xff]   ;;  %v724_v5 = vld [vmem:[%s1215_s4 + $0x14] ss:$8 sps:$4 sm:$0xff]  }
  0x4e   :  { %660 = vmatpush3.bf16.msra.mxu0 %v719_v1  ;;  %v92_v6 = vld [vmem:[%s1211_s0] sm:$0xf]  ;;  %270 = vmatprep.subr.bf16.mxu1 %v721_v3  ;;  %vm116_vm1 = vcmask 261120   ;;  %v726_v7 = vld [vmem:[%s1215_s4 + $0x10] ss:$8 sps:$4 sm:$0xff]   ;;  %v943_v20 = vmov 0  }
  0x4f   :  { %661 = vmatprep.subr.bf16.mxu0 %v941_v0  ;;  %271 = vmatpush1.bf16.msra.mxu1 %v723_v4  ;;  %v727_v8 = vld [vmem:[%s1215_s4 + $0x24] ss:$8 sps:$4 sm:$0xff]   ;;  %v729_v9 = vld [vmem:[%s1215_s4 + $0x20] ss:$8 sps:$4 sm:$0xff]   ;;  %v730_v10 = vld [vmem:[%s1215_s4 + $0x34] ss:$8 sps:$4 sm:$0xff]  }
  0x50   :  { %272 = vmatprep.subr.bf16.mxu1 %v724_v5  ;;  %v732_v11 = vld [vmem:[%s1215_s4 + $0x30] ss:$8 sps:$4 sm:$0xff]   ;;  %v733_v12 = vld [vmem:[%s1215_s4 + $0x44] ss:$8 sps:$4 sm:$0xff]   ;;  %v735_v13 = vld [vmem:[%s1215_s4 + $0x40] ss:$8 sps:$4 sm:$0xff]   ;;  %302 = vmatprep.mubr.bf16.mxu1 %v943_v20 }
  0x51   :  { %v736_v14 = vld [vmem:[%s1215_s4 + $0x54] ss:$8 sps:$4 sm:$0xff]   ;;  %v738_v15 = vld [vmem:[%s1215_s4 + $0x50] ss:$8 sps:$4 sm:$0xff]   ;;  %v739_v16 = vld [vmem:[%s1215_s4 + $0x64] ss:$8 sps:$4 sm:$0xff]  }
  0x52   :  { %662 = vmatpush3.bf16.msra.mxu0 %v720_v2  ;;  %v741_v17 = vld [vmem:[%s1215_s4 + $0x60] ss:$8 sps:$4 sm:$0xff]   ;;  %v742_v18 = vld [vmem:[%s1215_s4 + $0x74] ss:$8 sps:$4 sm:$0xff]   ;;  %v744_v19 = vld [vmem:[%s1215_s4 + $0x70] ss:$8 sps:$4 sm:$0xff]  }
  0x53   :  { %667 = vmatprep.subr.bf16.mxu0 %v941_v0  ;;  %273 = vmatpush1.bf16.msra.mxu1 %v726_v7  ;;  %v745_v21 = vld [vmem:[#allocation5] sm:$0xff]   ;;  %v746_v22 = vld [vmem:[#allocation5 + $0x8] sm:$0xff]   ;;  %v599_v23 = vld [vmem:[%s1214_s3] ss:$0 sm:$0xff]  ;;  %v181_v42 = vshrl.u32 %v180_v41, 7  ;;  %vm311_vm2 = vcmask 130048  }
  0x54   :  { %274 = vmatprep.subr.bf16.mxu1 %v727_v8  ;;  %v747_v31 = vld [vmem:[#allocation5 + $0x10] sm:$0xff]   ;;  %v748_v32 = vld [vmem:[#allocation5 + $0x18] sm:$0xff]   ;;  %v749_v33 = vld [vmem:[#allocation5 + $0x20] sm:$0xff]   ;;  %s944_s25 = smov [#allocation11]  }
  0x55   :  { %664 = vmatmul.mubr.msk.bf16.vlgmr.msra.gmra.mrb[0].mxu0 %vm116_vm1, %v92_v6  ;;  %v750_v34 = vld [vmem:[#allocation5 + $0x28] sm:$0xff]   ;;  %v751_v35 = vld [vmem:[#allocation5 + $0x30] sm:$0xff]   ;;  %v752_v36 = vld [vmem:[#allocation5 + $0x38] sm:$0xff]   ;;  %v182_v43 = vsub.s32 0, %v181_v42  ;;  %v186_v45 = vsub.s32 1, %v181_v42  ;;  %s571_s2 = sshll.u32 %s944_s25, 4  ;;  %s572_s2 = int_to_ptr.vmem [resolvable:$true] %s571_s2 }
  0x56   :  { %683 = vmatprep.mubr.msk.bf16.mxu0 %vm942_vm0, %v941_v0  ;;  %668 = vmatpush3.bf16.msra.mxu0 %v745_v21  ;;  %v753_v37 = vld [vmem:[%s1219_s8] sm:$0xff]   ;;  %v754_v38 = vld [vmem:[%s1219_s8 + $0x8] sm:$0xff]   ;;  %v755_v39 = vld [vmem:[%s1219_s8 + $0x10] sm:$0xff]   ;;  %s859_s24 = scalar_lea.vmem %s572_s2, 128  ;;  %p864_p5 = scmp.lt.s32.totalorder %s572_s2, %s572_s2 }
  0x57   :  { %275 = vmatpush1.bf16.msra.mxu1 %v729_v9  ;;  %669 = vmatprep.subr.bf16.mxu0 %v941_v0  ;;  %v756_v40 = vld [vmem:[%s1219_s8 + $0x18] sm:$0xff]   ;;  %v178_v44 = vld [vmem:[%s1216_s5] sm:$0x3]  ;;  %v758_v63 = vld [vmem:[%s1219_s8 + $0x28] sm:$0xff]   ;;  %p860_p4 = scmp.ne.s32.totalorder %s572_s2, %s859_s24  ;;  %p865_p6 = scmp.lt.s32.totalorder %s859_s24, %s859_s24 }
  0x58   :  { %276 = vmatprep.subr.bf16.mxu1 %v730_v10  ;;  %v183_v46 = vrot.slane %v178_v44, %v182_v43  ;;  %v187_v47 = vrot.slane %v178_v44, %v186_v45  ;;  %v314_v56 = vld [vmem:[%s1212_s1] sm:$0xf]  ;;  %v759_v1 = vld [vmem:[%s1219_s8 + $0x30] sm:$0xff]   ;;  %v760_v2 = vld [vmem:[%s1219_s8 + $0x38] sm:$0xff]  }
  0x59   :  { %v315_v57 = vunpack.c.l.bf16 %v314_v56  ;;  %v757_v62 = vld [vmem:[%s1219_s8 + $0x20] sm:$0xff]   ;;  %v619_v3 = vld [vmem:[#allocation7] ss:$0 sm:$0xff]  ;;  %p866_p7 = por %p865_p6, %p864_p5 }
  0x5a   :  { %670 = vmatpush3.bf16.msra.mxu0 %v746_v22 }
  0x5b   :  { %277 = vmatpush1.bf16.msra.mxu1 %v732_v11  ;;  %671 = vmatprep.subr.bf16.mxu0 %v941_v0  ;;  %p867_p8 = pnand %p866_p7, %p860_p4 }
  0x5c   :  { %278 = vmatprep.subr.bf16.mxu1 %v733_v12 }
  0x5e   :  { %672 = vmatpush3.bf16.msra.mxu0 %v747_v31 }
  0x5f   :  { %279 = vmatpush1.bf16.msra.mxu1 %v735_v13  ;;  %673 = vmatprep.subr.bf16.mxu0 %v941_v0 }
  0x60   :  { %280 = vmatprep.subr.bf16.mxu1 %v736_v14 }
  0x62   :  { %674 = vmatpush3.bf16.msra.mxu0 %v748_v32 }
  0x63   :  { %281 = vmatpush1.bf16.msra.mxu1 %v738_v15  ;;  %675 = vmatprep.subr.bf16.mxu0 %v941_v0 }
  0x64   :  { %282 = vmatprep.subr.bf16.mxu1 %v739_v16 }
  0x66   :  { %676 = vmatpush3.bf16.msra.mxu0 %v749_v33 }
  0x67   :  { %283 = vmatpush1.bf16.msra.mxu1 %v741_v17  ;;  %677 = vmatprep.subr.bf16.mxu0 %v941_v0 }
  0x68   :  { %284 = vmatprep.subr.bf16.mxu1 %v742_v18 }
  0x6a   :  { %678 = vmatpush3.bf16.msra.mxu0 %v750_v34 }
  0x6b   :  { %285 = vmatpush1.bf16.msra.mxu1 %v744_v19  ;;  %679 = vmatprep.subr.bf16.mxu0 %v941_v0 }
  0x6c   :  { %687 = vmatprep.subr.bf16.mxu1 %v941_v0 }
  0x6e   :  { %680 = vmatpush3.bf16.msra.mxu0 %v751_v35 }
  0x6f   :  { %681 = vmatprep.subr.bf16.mxu0 %v941_v0 }
  0x72   :  { %682 = vmatpush3.bf16.msra.mxu0 %v752_v36 }
 0x128   :  { %v154_v24 = vpop.f32.mrb[0].mxu0 }
 0x129   :  { %v155_v25 = vadd.f32 %v599_v23, %v154_v24  ;;  %v665_v26 = vpop.f32.mrb[1].mxu0 }
 0x12a   :  { %v157_v27 = vpop.f32.mrb[2].mxu0 }
 0x12b   :  { %761 = vtanh.f32 %v155_v25  ;;  %v666_v28 = vpop.f32.mrb[3].mxu0 }
 0x135   :  { %v762_v29 = vpop.eup %761 }
 0x136   :  { %v161_v30 = vpack.c.bf16 %v762_v29, %v762_v29 }
 0x138   :  { %303 = vmatmul.mubr.bf16.vlgmr.msra.gmra.mrb[0].mxu1 %v161_v30 }
 0x139   :  { %703 = vmatprep.mubr.msk.bf16.mxu1 %vm942_vm0, %v941_v0  ;;  %688 = vmatpush3.bf16.msra.mxu1 %v753_v37 }
 0x13a   :  { %689 = vmatprep.subr.bf16.mxu1 %v941_v0 }
 0x13d   :  { %690 = vmatpush3.bf16.msra.mxu1 %v754_v38 }
 0x13e   :  { %691 = vmatprep.subr.bf16.mxu1 %v941_v0 }
 0x141   :  { %692 = vmatpush3.bf16.msra.mxu1 %v755_v39 }
 0x142   :  { %693 = vmatprep.subr.bf16.mxu1 %v941_v0 }
 0x145   :  { %694 = vmatpush3.bf16.msra.mxu1 %v756_v40 }
 0x146   :  { %695 = vmatprep.subr.bf16.mxu1 %v941_v0 }
 0x149   :  { %696 = vmatpush3.bf16.msra.mxu1 %v757_v62 }
 0x14a   :  { %697 = vmatprep.subr.bf16.mxu1 %v941_v0 }
 0x14d   :  { %698 = vmatpush3.bf16.msra.mxu1 %v758_v63 }
 0x14e   :  { %699 = vmatprep.subr.bf16.mxu1 %v941_v0 }
 0x151   :  { %700 = vmatpush3.bf16.msra.mxu1 %v759_v1 }
 0x152   :  { %701 = vmatprep.subr.bf16.mxu1 %v941_v0 }
 0x155   :  { %702 = vmatpush3.bf16.msra.mxu1 %v760_v2 }
 0x20b   :  { %v304_v48 = vpop.f32.mrb[0].mxu1 }
 0x20c   :  { %v305_v49 = vadd.f32 %v304_v48, %v183_v46  ;;  %v306_v50 = vpop.f32.mrb[1].mxu1 }
 0x20d   :  { %v307_v51 = vadd.f32 %v306_v50, %v187_v47  ;;  %v308_v52 = vpop.f32.mrb[2].mxu1 }
 0x20e   :  { %v309_v53 = vpop.f32.mrb[3].mxu1  ;;  %312 = vst.msk [vmem:[#allocation11] sm:$0xff] %vm311_vm2, %v305_v49 }
 0x20f   :  { %v316_v54 = vmul.f32 0.5, %v307_v51  ;;  %313 = vst.msk [vmem:[#allocation13] sm:$0xff] %vm311_vm2, %v307_v51 }
 0x211   :  { %v317_v55 = vmul.f32 1.442695, %v316_v54 }
 0x213   :  { %763 = vpow2.f32 %v317_v55 }
 0x21d   :  { %v764_v58 = vpop.eup %763 }
 0x21e   :  { %v319_v59 = vmul.f32 %v764_v58, %v315_v57 }
 0x220   :  { %v320_v60 = vadd.f32 %v319_v59, %v305_v49 }
 0x222   :  { %v321_v61 = vpack.c.bf16 %v320_v60, %v320_v60 }
 0x224   :  { %684 = vmatmul.mubr.bf16.vlgmr.msra.gmra.mrb[4].mxu0 %v321_v61 }
 0x2f7   :  { %v427_v4 = vpop.f32.mrb[4].mxu0 }
 0x2f8   :  { %v428_v5 = vadd.f32 %v619_v3, %v427_v4  ;;  %v685_v6 = vpop.f32.mrb[5].mxu0 }
 0x2f9   :  { %v430_v7 = vpop.f32.mrb[6].mxu0 }
 0x2fa   :  { %765 = vtanh.f32 %v428_v5  ;;  %v686_v8 = vpop.f32.mrb[7].mxu0 }
 0x304   :  { %v766_v9 = vpop.eup %765 }
 0x305   :  { %v434_v10 = vpack.c.bf16 %v766_v9, %v766_v9 }
 0x307   :  { %704 = vmatmul.mubr.bf16.vlgmr.msra.gmra.mrb[4].mxu1 %v434_v10 }
 0x308   :  { %870 = shalt.err (!%p867_p8)
}
 0x309   :  { %s871_s16 = scalar_lea.hbm %s1222_s11, 128 }
 0x30a   :  { %p872_p9 = scmp.ne.s32.totalorder %s1222_s11, %s871_s16  ;;  %p875_p10 = scmp.lt.u32.totalorder %s871_s16, %s1222_s11 }
 0x30c   :  { %p877_p11 = pnand %p875_p10, %p872_p9 }
 0x30e   :  { %880 = shalt.err (!%p877_p11)
}
 0x30f   :  { %574 = dma.vmem_to_hbm [thread:$0]  %s572_s2, 128, %s1222_s11, [#allocation12]  }
 0x310   :  { %s945_s6 = smov [#allocation13]  }
 0x311   :  { %s581_s22 = sshll.u32 %s945_s6, 4  ;;  %s582_s22 = int_to_ptr.vmem [resolvable:$true] %s581_s22 }
 0x312   :  { %s881_s29 = scalar_lea.vmem %s582_s22, 128  ;;  %p886_p13 = scmp.lt.s32.totalorder %s582_s22, %s582_s22 }
 0x313   :  { %p882_p12 = scmp.ne.s32.totalorder %s582_s22, %s881_s29  ;;  %p887_p0 = scmp.lt.s32.totalorder %s881_s29, %s881_s29 }
 0x315   :  { %p888_p1 = por %p887_p0, %p886_p13 }
 0x317   :  { %p889_p2 = pnand %p888_p1, %p882_p12 }
 0x319   :  { %892 = shalt.err (!%p889_p2)
}
 0x31a   :  { %s893_s18 = scalar_lea.hbm %s1223_s12, 128 }
 0x31b   :  { %p894_p3 = scmp.ne.s32.totalorder %s1223_s12, %s893_s18  ;;  %p897_p4 = scmp.lt.u32.totalorder %s893_s18, %s1223_s12 }
 0x31d   :  { %p899_p5 = pnand %p897_p4, %p894_p3 }
 0x31f   :  { %902 = shalt.err (!%p899_p5)
}
 0x320   :  { %584 = dma.vmem_to_hbm [thread:$0]  %s582_s22, 128, %s1223_s12, [#allocation12]   ;;  %v628_v0 = vld [vmem:[#allocation8] ss:$0 sm:$0xff]  ;;  %vm553_vm3 = vcmask 257024  }
 0x321   :  { %s946_s14 = smov [#allocation10]  }
 0x322   :  { %s561_s1 = sshll.u32 %s946_s14, 4  ;;  %s562_s1 = int_to_ptr.vmem [resolvable:$true] %s561_s1 }
 0x323   :  { %s903_s20 = scalar_lea.vmem %s562_s1, 64  ;;  %p908_p7 = scmp.lt.s32.totalorder %s562_s1, %s562_s1 }
 0x324   :  { %p904_p6 = scmp.ne.s32.totalorder %s562_s1, %s903_s20  ;;  %p909_p8 = scmp.lt.s32.totalorder %s903_s20, %s903_s20 }
 0x326   :  { %p910_p9 = por %p909_p8, %p908_p7 }
 0x328   :  { %p911_p10 = pnand %p910_p9, %p904_p6 }
 0x3da   :  { %v540_v11 = vpop.f32.mrb[4].mxu1 }
 0x3db   :  { %v541_v12 = vadd.f32 %v628_v0, %v540_v11  ;;  %v705_v13 = vpop.f32.mrb[5].mxu1 }
 0x3dc   :  { %v543_v14 = vpop.f32.mrb[6].mxu1 }
 0x3dd   :  { %v637_v15 = vmul.f32 -1.442695, %v541_v12  ;;  %v706_v16 = vpop.f32.mrb[7].mxu1 }
 0x3df   :  { %767 = vpow2.f32 %v637_v15 }
 0x3e9   :  { %v768_v17 = vpop.eup %767 }
 0x3ea   :  { %v549_v18 = vadd.f32 1.0, %v768_v17 }
 0x3ec   :  { %769 = vrcp.f32 %v549_v18 }
 0x3f6   :  { %v770_v19 = vpop.eup %769 }
 0x3f7   :  { %v552_v20 = vpack.c.bf16 %v770_v19, %v770_v19 }
 0x3f9   :  { %554 = vst.msk [vmem:[#allocation10] sm:$0xf] %vm553_vm3, %v552_v20 }
 0x3fa   :  { %914 = shalt.err (!%p911_p10)
}
 0x3fb   :  { %s915_s23 = scalar_lea.hbm %s1221_s10, 64 }
 0x3fc   :  { %p916_p11 = scmp.ne.s32.totalorder %s1221_s10, %s915_s23  ;;  %p919_p12 = scmp.lt.u32.totalorder %s915_s23, %s1221_s10 }
 0x3fe   :  { %p921_p13 = pnand %p919_p12, %p916_p11 }
 0x400   :  { %924 = shalt.err (!%p921_p13)
}
 0x401   :  { %564 = dma.vmem_to_hbm [thread:$0]  %s562_s1, 64, %s1221_s10, [#allocation4]  }
 0x402   :  { %931 = dma.done.wait [#allocation4], 64  }
 0x403   :  { %932 = vsyncadd [#allocation4], 4294967232 }
 0x404   :  { %933 = dma.done.wait [#allocation12], 256  }
 0x405   :  { %934 = vsyncadd [#allocation12], 4294967040 }
 0x406   :  { %594 = vsyncpa [#allocation3], 1 }
 0x407   :  { %595 = vsyncpa [#allocation6], 1 }
 0x408   :  { %596 = vsyncpa [#allocation9], 1 }
 0x409   :  { %597 = vsyncpa [#allocation4], 1 }
 0x40a   :  { %598 = vsyncpa [#allocation12], 1 }

</bundles_post_ra>
